<compile_context>
chip_gen: v5e
topology: v5e:2x2
jax: 0.10.0
libtpu: 0.0.40
codegen_flags: <defaults>
</compile_context>

<pallas_src>
import functools
import math

import jax
import jax.numpy as jnp
from jax.experimental import pallas as pl
from jax.experimental.pallas import tpu as pltpu


def _ceil_to(v, m):
    return ((v + m - 1) // m) * m


def _leaky_relu(v, slope=0.01):
    return jnp.where(v >= 0, v, slope * v)


def _ca_kernel(x_ref, w1t_ref, b1_ref, w2t_ref, b2_ref, o_ref,
               sum_acc, max_acc, *, s_true, s_tile, inv_s, b_tile, mask_s):
    """Streaming pooling + fused 1x1-conv MLP + sigmoid.

    x_ref : (b_tile, C, s_tile)  current spatial tile of the input
    w1t   : (C, Hc)   w1 pre-transposed          b1 : (1, Hc)
    w2t   : (Hc, C)   w2 pre-transposed          b2 : (1, C)
    o_ref : (b_tile, C)
    sum_acc / max_acc : (b_tile, C) f32 VMEM scratch accumulators
    """
    s_idx = pl.program_id(1)

    @pl.when(s_idx == 0)
    def _init():
        sum_acc[...] = jnp.zeros_like(sum_acc)
        max_acc[...] = jnp.full_like(max_acc, -jnp.inf)

    tile = x_ref[...].astype(jnp.float32)          # (b_tile, C, s_tile)

    if mask_s:
        # Only the last S tile contains padded columns; mask them out.
        col = s_idx * s_tile + jax.lax.broadcasted_iota(jnp.int32, tile.shape, 2)
        valid = col < s_true
        tile_for_sum = jnp.where(valid, tile, 0.0)
        tile_for_max = jnp.where(valid, tile, -jnp.inf)
    else:
        tile_for_sum = tile
        tile_for_max = tile

    # Per-tile partial reductions (hidden under the next tile's DMA).
    sum_acc[...] = sum_acc[...] + jnp.sum(tile_for_sum, axis=-1)
    max_acc[...] = jnp.maximum(max_acc[...], jnp.max(tile_for_max, axis=-1))

    @pl.when(s_idx == pl.num_programs(1) - 1)
    def _finalize():
        z_avg = sum_acc[...] * inv_s               # (b_tile, C)
        z_max = max_acc[...]                       # (b_tile, C)

        def branch(z):
            h = jnp.dot(z, w1t_ref[...], preferred_element_type=jnp.float32) + b1_ref[...]
            h = _leaky_relu(h)
            o = jnp.dot(h, w2t_ref[...], preferred_element_type=jnp.float32) + b2_ref[...]
            return _leaky_relu(o)

        out = jax.nn.sigmoid(branch(z_avg) + branch(z_max))
        o_ref[...] = out.astype(o_ref.dtype)


def channel_attention(x, w1, b1, w2, b2, *, max_s_tile=2048, max_rows_per_tile=256):
    """x: (B, C, *spatial).  Returns (B, C, *1) — sigmoid channel attention weights."""
    B, C = x.shape[0], x.shape[1]
    spatial = x.shape[2:]
    S = int(math.prod(spatial)) if spatial else 1
    Hc = w1.shape[0]

    # --- tiling: ~2 MiB f32 input tiles, double-buffered -> << v7x 64 MiB VMEM ---
    b_tile = max(1, min(B, max_rows_per_tile // max(C, 1)))
    B_pad = _ceil_to(B, b_tile)
    s_tile = min(max_s_tile, _ceil_to(S, 128))
    S_pad = _ceil_to(S, s_tile)

    x_flat = x.reshape(B, C, S)
    if (B_pad != B) or (S_pad != S):
        x_flat = jnp.pad(x_flat, ((0, B_pad - B), (0, 0), (0, S_pad - S)))

    # Pre-transpose weights so the kernel does plain (z @ w) with no in-kernel .T.
    w1_t = jnp.transpose(w1).astype(jnp.float32)   # (C, Hc)
    w2_t = jnp.transpose(w2).astype(jnp.float32)   # (Hc, C)
    b1_2d = b1.reshape(1, Hc).astype(jnp.float32)
    b2_2d = b2.reshape(1, C).astype(jnp.float32)

    n_r = B_pad // b_tile
    n_s = S_pad // s_tile

    kernel = functools.partial(
        _ca_kernel,
        s_true=S, s_tile=s_tile, inv_s=float(1.0 / S),
        b_tile=b_tile, mask_s=(S_pad != S),
    )

    bytes_x = int(x_flat.size) * x_flat.dtype.itemsize
    cost = pl.CostEstimate(
        flops=int(2 * B * C * S + 8 * B * C * Hc),
        transcendentals=int(B * C),
        bytes_accessed=int(bytes_x + (w1.size + w2.size + b1.size + b2.size + B * C) * 4),
    )

    out = pl.pallas_call(
        kernel,
        out_shape=jax.ShapeDtypeStruct((B_pad, C), x.dtype),
        grid_spec=pltpu.PrefetchScalarGridSpec(
            num_scalar_prefetch=0,
            grid=(n_r, n_s),
            in_specs=[
                pl.BlockSpec((b_tile, C, s_tile), lambda r, s: (r, 0, s)),  # x tile
                pl.BlockSpec((C, Hc), lambda r, s: (0, 0)),                 # w1^T
                pl.BlockSpec((1, Hc), lambda r, s: (0, 0)),                 # b1
                pl.BlockSpec((Hc, C), lambda r, s: (0, 0)),                 # w2^T
                pl.BlockSpec((1, C), lambda r, s: (0, 0)),                  # b2
            ],
            out_specs=pl.BlockSpec((b_tile, C), lambda r, s: (r, 0)),
            scratch_shapes=[
                pltpu.VMEM((b_tile, C), jnp.float32),   # running sum
                pltpu.VMEM((b_tile, C), jnp.float32),   # running max
            ],
        ),
        compiler_params=pltpu.CompilerParams(
            dimension_semantics=("parallel", "arbitrary")),
        cost_estimate=cost,
    )(x_flat, w1_t, b1_2d, w2_t, b2_2d)

    out = out[:B]
    return out.reshape((B, C) + (1,) * len(spatial))


def _reference(x, w1, b1, w2, b2):
    """Pure-JAX reference mirroring the PyTorch forward."""
    B, C = x.shape[0], x.shape[1]
    red_axes = tuple(range(2, x.ndim))
    x_avg = jnp.mean(x, axis=red_axes)
    x_max = jnp.max(x, axis=red_axes)

    def branch(z):
        h = z @ w1.T + b1
        h = jnp.where(h >= 0, h, 0.01 * h)
        o = h @ w2.T + b2
        return jnp.where(o >= 0, o, 0.01 * o)

    out = jax.nn.sigmoid(branch(x_avg) + branch(x_max))
    return out.reshape((B, C) + (1,) * (x.ndim - 2))


if __name__ == "__main__":
    # Options: num_dim=2, channel=4, hidden_channel=8
    B, C, HC, H, W = 2, 4, 8, 16, 16

    key = jax.random.PRNGKey(0)
    kx, k1, k2, k3, k4 = jax.random.split(key, 5)

    x = jax.random.normal(kx, (B, C, H, W), dtype=jnp.float32)
    # conv1: 1x1 conv, in=C, out=HC  -> weight (HC, C), bias (HC,)
    w1 = jax.random.normal(k1, (HC, C), dtype=jnp.float32) * 0.2
    b1 = jax.random.normal(k2, (HC,), dtype=jnp.float32) * 0.1
    # conv2: 1x1 conv, in=HC, out=C  -> weight (C, HC), bias (C,)
    w2 = jax.random.normal(k3, (C, HC), dtype=jnp.float32) * 0.2
    b2 = jax.random.normal(k4, (C,), dtype=jnp.float32) * 0.1

    ref = _reference(x, w1, b1, w2, b2)

    # Main run (single S tile).
    out = jax.block_until_ready(channel_attention(x, w1, b1, w2, b2))
    assert out.shape == (B, C, 1, 1)
    assert jnp.allclose(out, ref, atol=1e-5, rtol=1e-5), "mismatch vs reference"

    # Exercise multi-step spatial accumulation (grid over S).
    out2 = jax.block_until_ready(channel_attention(x, w1, b1, w2, b2, max_s_tile=128))
    assert jnp.allclose(out2, ref, atol=1e-5, rtol=1e-5), "mismatch (tiled S)"

    # Exercise S padding/masking and multiple batch tiles (odd spatial size).
    B2, H2, W2 = 3, 13, 13
    x2 = jax.random.normal(kx, (B2, C, H2, W2), dtype=jnp.float32)
    ref2 = _reference(x2, w1, b1, w2, b2)
    out3 = jax.block_until_ready(channel_attention(x2, w1, b1, w2, b2))
    assert jnp.allclose(out3, ref2, atol=1e-5, rtol=1e-5), "mismatch (masked S)"
    out4 = jax.block_until_ready(
        channel_attention(x2, w1, b1, w2, b2, max_rows_per_tile=4))
    assert jnp.allclose(out4, ref2, atol=1e-5, rtol=1e-5), "mismatch (multi row-tile)"

    print("KERNEL_OK")
</pallas_src>

<mosaic_0001>
module attributes {stable_mosaic.version = 11 : i64} {
  func.func @_ca_kernel(%arg0: i32, %arg1: i32, %arg2: memref<2x4x256xf32, #tpu.memory_space<vmem>>, %arg3: memref<4x8xf32, #tpu.memory_space<vmem>>, %arg4: memref<1x8xf32, #tpu.memory_space<vmem>>, %arg5: memref<8x4xf32, #tpu.memory_space<vmem>>, %arg6: memref<1x4xf32, #tpu.memory_space<vmem>>, %arg7: memref<2x4xf32, #tpu.memory_space<vmem>>, %arg8: memref<2x4xf32, #tpu.memory_space<vmem>>, %arg9: memref<2x4xf32, #tpu.memory_space<vmem>>) attributes {dimension_semantics = [#tpu.dimension_semantics<parallel>, #tpu.dimension_semantics<arbitrary>], iteration_bounds = array<i64: 1, 1>, scalar_prefetch = 0 : i64, scratch_operands = 2 : i64, tpu.core_type = #tpu.core_type<tc>, window_params = [{transform_indices = @transform_0, window_bounds = array<i64: 2, 4, 256>}, {pipeline_mode = #tpu.pipeline_mode<synchronous>, transform_indices = @transform_1, window_bounds = array<i64: 4, 8>}, {pipeline_mode = #tpu.pipeline_mode<synchronous>, transform_indices = @transform_2, window_bounds = array<i64: 1, 8>}, {pipeline_mode = #tpu.pipeline_mode<synchronous>, transform_indices = @transform_3, window_bounds = array<i64: 8, 4>}, {pipeline_mode = #tpu.pipeline_mode<synchronous>, transform_indices = @transform_4, window_bounds = array<i64: 1, 4>}, {transform_indices = @transform_5, window_bounds = array<i64: 2, 4>}]} {
    %c0_i32 = arith.constant 0 : i32
    %0 = arith.cmpi eq, %arg1, %c0_i32 : i32
    %1 = arith.extui %0 : i1 to i32
    %c0_i32_0 = arith.constant 0 : i32
    %2 = arith.cmpi ne, %1, %c0_i32_0 : i32
    scf.if %2 {
      %cst_14 = arith.constant 0.000000e+00 : f32
      %15 = vector.broadcast %cst_14 : f32 to vector<2x4xf32>
      %c0_15 = arith.constant 0 : index
      %c0_16 = arith.constant 0 : index
      %16 = vector.load %arg8[%c0_15, %c0_16] : memref<2x4xf32, #tpu.memory_space<vmem>>, vector<2x4xf32>
      tpu.vector_store %arg8[%c0_15, %c0_16], %15 {strides = array<i32>} : memref<2x4xf32, #tpu.memory_space<vmem>>, vector<2x4xf32>,
      %cst_17 = arith.constant 0xFF800000 : f32
      %17 = vector.broadcast %cst_17 : f32 to vector<2x4xf32>
      %c0_18 = arith.constant 0 : index
      %c0_19 = arith.constant 0 : index
      %18 = vector.load %arg9[%c0_18, %c0_19] : memref<2x4xf32, #tpu.memory_space<vmem>>, vector<2x4xf32>
      tpu.vector_store %arg9[%c0_18, %c0_19], %17 {strides = array<i32>} : memref<2x4xf32, #tpu.memory_space<vmem>>, vector<2x4xf32>,
    } else {
    }
    %c0 = arith.constant 0 : index
    %c0_1 = arith.constant 0 : index
    %c0_2 = arith.constant 0 : index
    %3 = vector.load %arg2[%c0, %c0_1, %c0_2] : memref<2x4x256xf32, #tpu.memory_space<vmem>>, vector<2x4x256xf32>
    %c0_3 = arith.constant 0 : index
    %c0_4 = arith.constant 0 : index
    %4 = vector.load %arg8[%c0_3, %c0_4] : memref<2x4xf32, #tpu.memory_space<vmem>>, vector<2x4xf32>
    %cst = arith.constant dense<0.000000e+00> : vector<2x4xf32>
    %5 = vector.multi_reduction <add>, %3, %cst [2] : vector<2x4x256xf32> to vector<2x4xf32>
    %6 = arith.addf %4, %5 : vector<2x4xf32>
    %c0_5 = arith.constant 0 : index
    %c0_6 = arith.constant 0 : index
    %7 = vector.load %arg8[%c0_5, %c0_6] : memref<2x4xf32, #tpu.memory_space<vmem>>, vector<2x4xf32>
    tpu.vector_store %arg8[%c0_5, %c0_6], %6 {strides = array<i32>} : memref<2x4xf32, #tpu.memory_space<vmem>>, vector<2x4xf32>,
    %c0_7 = arith.constant 0 : index
    %c0_8 = arith.constant 0 : index
    %8 = vector.load %arg9[%c0_7, %c0_8] : memref<2x4xf32, #tpu.memory_space<vmem>>, vector<2x4xf32>
    %cst_9 = arith.constant dense<0xFF800000> : vector<2x4xf32>
    %9 = vector.multi_reduction <maximumf>, %3, %cst_9 [2] : vector<2x4x256xf32> to vector<2x4xf32>
    %10 = arith.maximumf %8, %9 : vector<2x4xf32>
    %c0_10 = arith.constant 0 : index
    %c0_11 = arith.constant 0 : index
    %11 = vector.load %arg9[%c0_10, %c0_11] : memref<2x4xf32, #tpu.memory_space<vmem>>, vector<2x4xf32>
    tpu.vector_store %arg9[%c0_10, %c0_11], %10 {strides = array<i32>} : memref<2x4xf32, #tpu.memory_space<vmem>>, vector<2x4xf32>,
    %c0_i32_12 = arith.constant 0 : i32
    %12 = arith.cmpi eq, %arg1, %c0_i32_12 : i32
    %13 = arith.extui %12 : i1 to i32
    %c0_i32_13 = arith.constant 0 : i32
    %14 = arith.cmpi ne, %13, %c0_i32_13 : i32
    scf.if %14 {
      %c0_14 = arith.constant 0 : index
      %c0_15 = arith.constant 0 : index
      %15 = vector.load %arg8[%c0_14, %c0_15] : memref<2x4xf32, #tpu.memory_space<vmem>>, vector<2x4xf32>
      %cst_16 = arith.constant 3.906250e-03 : f32
      %16 = vector.broadcast %cst_16 : f32 to vector<2x4xf32>
      %17 = arith.mulf %15, %16 : vector<2x4xf32>
      %c0_17 = arith.constant 0 : index
      %c0_18 = arith.constant 0 : index
      %18 = vector.load %arg9[%c0_17, %c0_18] : memref<2x4xf32, #tpu.memory_space<vmem>>, vector<2x4xf32>
      %c0_19 = arith.constant 0 : index
      %c0_20 = arith.constant 0 : index
      %19 = vector.load %arg3[%c0_19, %c0_20] : memref<4x8xf32, #tpu.memory_space<vmem>>, vector<4x8xf32>
      %cst_21 = arith.constant dense<0.000000e+00> : vector<2x8xf32>
      %20 = tpu.matmul %17, %19, %cst_21 {dimension_numbers = #tpu.dot_dimension_numbers<[1], [0], [0], [1], [0, 0, 1, 1], [], []>} : vector<2x4xf32>, vector<4x8xf32>, vector<2x8xf32> -> vector<2x8xf32>
      %c0_22 = arith.constant 0 : index
      %c0_23 = arith.constant 0 : index
      %21 = vector.load %arg4[%c0_22, %c0_23] : memref<1x8xf32, #tpu.memory_space<vmem>>, vector<1x8xf32>
      %22 = vector.broadcast %21 : vector<1x8xf32> to vector<2x8xf32>
      %23 = arith.addf %20, %22 : vector<2x8xf32>
      %cst_24 = arith.constant 0.000000e+00 : f32
      %24 = vector.broadcast %cst_24 : f32 to vector<2x8xf32>
      %25 = arith.cmpf oge, %23, %24 : vector<2x8xf32>
      %cst_25 = arith.constant 0.00999999977 : f32
      %26 = vector.broadcast %cst_25 : f32 to vector<2x8xf32>
      %27 = arith.mulf %26, %23 : vector<2x8xf32>
      %28 = arith.select %25, %23, %27 : vector<2x8xi1>, vector<2x8xf32>
      %c0_26 = arith.constant 0 : index
      %c0_27 = arith.constant 0 : index
      %29 = vector.load %arg5[%c0_26, %c0_27] : memref<8x4xf32, #tpu.memory_space<vmem>>, vector<8x4xf32>
      %cst_28 = arith.constant dense<0.000000e+00> : vector<2x4xf32>
      %30 = tpu.matmul %28, %29, %cst_28 {dimension_numbers = #tpu.dot_dimension_numbers<[1], [0], [0], [1], [0, 0, 1, 1], [], []>} : vector<2x8xf32>, vector<8x4xf32>, vector<2x4xf32> -> vector<2x4xf32>
      %c0_29 = arith.constant 0 : index
      %c0_30 = arith.constant 0 : index
      %31 = vector.load %arg6[%c0_29, %c0_30] : memref<1x4xf32, #tpu.memory_space<vmem>>, vector<1x4xf32>
      %32 = vector.broadcast %31 : vector<1x4xf32> to vector<2x4xf32>
      %33 = arith.addf %30, %32 : vector<2x4xf32>
      %cst_31 = arith.constant 0.000000e+00 : f32
      %34 = vector.broadcast %cst_31 : f32 to vector<2x4xf32>
      %35 = arith.cmpf oge, %33, %34 : vector<2x4xf32>
      %cst_32 = arith.constant 0.00999999977 : f32
      %36 = vector.broadcast %cst_32 : f32 to vector<2x4xf32>
      %37 = arith.mulf %36, %33 : vector<2x4xf32>
      %38 = arith.select %35, %33, %37 : vector<2x4xi1>, vector<2x4xf32>
      %c0_33 = arith.constant 0 : index
      %c0_34 = arith.constant 0 : index
      %39 = vector.load %arg3[%c0_33, %c0_34] : memref<4x8xf32, #tpu.memory_space<vmem>>, vector<4x8xf32>
      %cst_35 = arith.constant dense<0.000000e+00> : vector<2x8xf32>
      %40 = tpu.matmul %18, %39, %cst_35 {dimension_numbers = #tpu.dot_dimension_numbers<[1], [0], [0], [1], [0, 0, 1, 1], [], []>} : vector<2x4xf32>, vector<4x8xf32>, vector<2x8xf32> -> vector<2x8xf32>
      %c0_36 = arith.constant 0 : index
      %c0_37 = arith.constant 0 : index
      %41 = vector.load %arg4[%c0_36, %c0_37] : memref<1x8xf32, #tpu.memory_space<vmem>>, vector<1x8xf32>
      %42 = vector.broadcast %41 : vector<1x8xf32> to vector<2x8xf32>
      %43 = arith.addf %40, %42 : vector<2x8xf32>
      %cst_38 = arith.constant 0.000000e+00 : f32
      %44 = vector.broadcast %cst_38 : f32 to vector<2x8xf32>
      %45 = arith.cmpf oge, %43, %44 : vector<2x8xf32>
      %cst_39 = arith.constant 0.00999999977 : f32
      %46 = vector.broadcast %cst_39 : f32 to vector<2x8xf32>
      %47 = arith.mulf %46, %43 : vector<2x8xf32>
      %48 = arith.select %45, %43, %47 : vector<2x8xi1>, vector<2x8xf32>
      %c0_40 = arith.constant 0 : index
      %c0_41 = arith.constant 0 : index
      %49 = vector.load %arg5[%c0_40, %c0_41] : memref<8x4xf32, #tpu.memory_space<vmem>>, vector<8x4xf32>
      %cst_42 = arith.constant dense<0.000000e+00> : vector<2x4xf32>
      %50 = tpu.matmul %48, %49, %cst_42 {dimension_numbers = #tpu.dot_dimension_numbers<[1], [0], [0], [1], [0, 0, 1, 1], [], []>} : vector<2x8xf32>, vector<8x4xf32>, vector<2x4xf32> -> vector<2x4xf32>
      %c0_43 = arith.constant 0 : index
      %c0_44 = arith.constant 0 : index
      %51 = vector.load %arg6[%c0_43, %c0_44] : memref<1x4xf32, #tpu.memory_space<vmem>>, vector<1x4xf32>
      %52 = vector.broadcast %51 : vector<1x4xf32> to vector<2x4xf32>
      %53 = arith.addf %50, %52 : vector<2x4xf32>
      %cst_45 = arith.constant 0.000000e+00 : f32
      %54 = vector.broadcast %cst_45 : f32 to vector<2x4xf32>
      %55 = arith.cmpf oge, %53, %54 : vector<2x4xf32>
      %cst_46 = arith.constant 0.00999999977 : f32
      %56 = vector.broadcast %cst_46 : f32 to vector<2x4xf32>
      %57 = arith.mulf %56, %53 : vector<2x4xf32>
      %58 = arith.select %55, %53, %57 : vector<2x4xi1>, vector<2x4xf32>
      %59 = arith.addf %38, %58 : vector<2x4xf32>
      %60 = arith.negf %59 : vector<2x4xf32>
      %61 = math.exp %60 : vector<2x4xf32>
      %cst_47 = arith.constant 1.000000e+00 : f32
      %62 = vector.broadcast %cst_47 : f32 to vector<2x4xf32>
      %63 = arith.addf %62, %61 : vector<2x4xf32>
      %64 = arith.divf %62, %63 : vector<2x4xf32>
      %c0_48 = arith.constant 0 : index
      %c0_49 = arith.constant 0 : index
      %65 = vector.load %arg7[%c0_48, %c0_49] : memref<2x4xf32, #tpu.memory_space<vmem>>, vector<2x4xf32>
      tpu.vector_store %arg7[%c0_48, %c0_49], %64 {strides = array<i32>} : memref<2x4xf32, #tpu.memory_space<vmem>>, vector<2x4xf32>,
    } else {
    }
    return
  }
  func.func @transform_0(%arg0: i32, %arg1: i32) -> (i32, i32, i32) {
    %c0_i32 = arith.constant 0 : i32
    %c0_i32_0 = arith.constant 0 : i32
    return %arg0, %c0_i32, %arg1 : i32, i32, i32
  }
  func.func @transform_1(%arg0: i32, %arg1: i32) -> (i32, i32) {
    %c0_i32 = arith.constant 0 : i32
    %c0_i32_0 = arith.constant 0 : i32
    %c0_i32_1 = arith.constant 0 : i32
    return %c0_i32, %c0_i32_0 : i32, i32
  }
  func.func @transform_2(%arg0: i32, %arg1: i32) -> (i32, i32) {
    %c0_i32 = arith.constant 0 : i32
    %c0_i32_0 = arith.constant 0 : i32
    %c0_i32_1 = arith.constant 0 : i32
    return %c0_i32, %c0_i32_0 : i32, i32
  }
  func.func @transform_3(%arg0: i32, %arg1: i32) -> (i32, i32) {
    %c0_i32 = arith.constant 0 : i32
    %c0_i32_0 = arith.constant 0 : i32
    %c0_i32_1 = arith.constant 0 : i32
    return %c0_i32, %c0_i32_0 : i32, i32
  }
  func.func @transform_4(%arg0: i32, %arg1: i32) -> (i32, i32) {
    %c0_i32 = arith.constant 0 : i32
    %c0_i32_0 = arith.constant 0 : i32
    %c0_i32_1 = arith.constant 0 : i32
    return %c0_i32, %c0_i32_0 : i32, i32
  }
  func.func @transform_5(%arg0: i32, %arg1: i32) -> (i32, i32) {
    %c0_i32 = arith.constant 0 : i32
    %c0_i32_0 = arith.constant 0 : i32
    return %arg0, %c0_i32 : i32, i32
  }
}

</mosaic_0001>

<bundles_post_ra>
// kernel: tpu_custom_call.1
= control target key start
LH: loop header
LB: loop body
LE: loop exit
PB: predicated region body
PF: predicated region fallthrough
CT: control target
= control target key end

     0   :  { %10 = vsyncpa [#allocation5], 0  ;;  %s416_s0 = inlined_call_operand.hbm [shape: f32[2,4,256], index: 0, kind: input, shape index: {}]   ;;  %s417_s1 = inlined_call_operand.vmem [shape: f32[4,8], index: 1, kind: input, shape index: {}]   ;;  %s418_s2 = inlined_call_operand.vmem [shape: f32[1,8], index: 2, kind: input, shape index: {}]   ;;  %s419_s3 = inlined_call_operand.vmem [shape: f32[8,4], index: 3, kind: input, shape index: {}]   ;;  %s420_s4 = inlined_call_operand.vmem [shape: f32[1,4], index: 4, kind: input, shape index: {}]   ;;  %s421_s5 = inlined_call_operand.hbm [shape: f32[2,4], index: 5, kind: output, shape index: {}]  }
   0x1   :  { %11 = vsyncpa [#allocation6], 0  ;;  %s16_s20 = sshll.u32 %s416_s0, 4  ;;  %s347_s21 = smov [#allocation4]   ;;  %s17_s20 = int_to_ptr.hbm [resolvable:$true] %s16_s20 }
   0x2   :  { %s18_s22 = sshll.u32 %s347_s21, 4  ;;  %s348_s23 = smov 128   ;;  %s19_s22 = int_to_ptr.vmem [resolvable:$true] %s18_s22 }
   0x3   :  { %s349_s24 = smov 8  }
   0x4   :  { %24 = dma.hbm_to_vmem [thread:$0]  %s17_s20, 256, %s19_s22, [#allocation5], %s348_s23, %s348_s23, %s349_s24  }
   0x5   :  { %343 = dma.done.wait [#allocation5], 256  }
   0x6   :  { %344 = vsyncadd [#allocation5], 4294967040  ;;  %v44_v0 = vld [vmem:[#allocation4] sm:$0xff]  ;;  %v45_v1 = vld [vmem:[#allocation4 + $0x8] sm:$0xff]  ;;  %vm60_vm0 = vcmask 1043456   ;;  %vm41_vm1 = vcmask 25600   ;;  %v73_v26 = vlaneseq }
   0x7   :  { %49 = vst [vmem:[#allocation1] ss:$2 sm:$0xff] %v44_v0  ;;  %v350_v22 = vmov 0.0   ;;  %v351_v23 = vmov -inf   ;;  %v119_v24 = vld [vmem:[%s417_s1] sm:$0xf] }
   0x8   :  { %53 = vst [vmem:[#allocation1 + $0x10] ss:$2 sm:$0xff] %v45_v1  ;;  %276 = vmatpush.msk.msra.mxu0 %vm60_vm0, %v119_v24  ;;  %279 = vmatpush.msk.msra.mxu2 %vm60_vm0, %v119_v24  ;;  %v74_v27 = vand.u32 127, %v73_v26  ;;  %vm77_vm2 = vcmask 1041409   ;;  %vm124_vm3 = vcmask 31744   ;;  %v154_v44 = vld [vmem:[%s419_s3] sm:$0xff] }
   0x9   :  { %42 = vst.msk [vmem:[#allocation2] sm:$0x3] %vm41_vm1, %v350_v22  ;;  %178 = vmatpush.msra.mxu1 %v154_v44  ;;  %230 = vmatpush.msra.mxu3 %v154_v44  ;;  %v289_v45 = vld [vmem:[%s418_s2] ss:$0 sm:$0xff]  ;;  %vm159_vm5 = vcmask 64512   ;;  %s352_s2 = smov [#allocation7]  }
   0xa   :  { %43 = vst.msk [vmem:[#allocation3] sm:$0x3] %vm41_vm1, %v351_v23  ;;  %v290_v54 = vld [vmem:[%s420_s4] ss:$0 sm:$0xff]  ;;  %s264_s4 = sshll.u32 %s352_s2, 4  ;;  %s266_s7 = sshll.u32 %s421_s5, 4  ;;  %s265_s4 = int_to_ptr.vmem [resolvable:$true] %s264_s4  ;;  %s267_s7 = int_to_ptr.hbm [resolvable:$true] %s266_s7 }
   0xe   :  { %v50_v2 = vld.sshfl [vmem:[#allocation1] sm:$0xff pattern:$0x75316420]  ;;  %v51_v3 = vld.sshfl [vmem:[#allocation1 + $0x8] sm:$0xff pattern:$0x75316420] }
   0xf   :  { %v61_v4 = vsel %vm60_vm0, %v50_v2, 0.0  ;;  %v62_v5 = vsel %vm60_vm0, %v51_v3, 0.0  ;;  %84 = vst [vmem:[#allocation1] ss:$2 sm:$0xff] %v44_v0 }
  0x10   :  { %v63_v6 = vadd.f32 %v62_v5, %v61_v4  ;;  %v54_v7 = vld.sshfl [vmem:[#allocation1 + $0x10] sm:$0xff pattern:$0x75316420]  ;;  %v55_v8 = vld.sshfl [vmem:[#allocation1 + $0x18] sm:$0xff pattern:$0x75316420] }
  0x11   :  { %88 = vst [vmem:[#allocation1 + $0x10] ss:$2 sm:$0xff] %v45_v1  ;;  %v66_v9 = vsel %vm60_vm0, %v54_v7, 0.0  ;;  %v67_v10 = vsel %vm60_vm0, %v55_v8, 0.0  ;;  %v46_v31 = vld [vmem:[#allocation2] sm:$0x3] }
  0x12   :  { %64 = vadd.xlane.f32.xlu1 %v63_v6  ;;  %v68_v13 = vadd.f32 %v67_v10, %v66_v9  ;;  %v83_v37 = vld [vmem:[#allocation3] sm:$0x3] }
  0x16   :  { %v85_v11 = vld.sshfl [vmem:[#allocation1] sm:$0xff pattern:$0x75316420]  ;;  %v86_v12 = vld.sshfl [vmem:[#allocation1 + $0x8] sm:$0xff pattern:$0x75316420] }
  0x17   :  { %v95_v14 = vsel %vm60_vm0, %v85_v11, -inf  ;;  %v96_v15 = vsel %vm60_vm0, %v86_v12, -inf }
  0x18   :  { %v97_v16 = vmax.f32 %v95_v14, %v96_v15  ;;  %v89_v17 = vld.sshfl [vmem:[#allocation1 + $0x10] sm:$0xff pattern:$0x75316420]  ;;  %v90_v18 = vld.sshfl [vmem:[#allocation1 + $0x18] sm:$0xff pattern:$0x75316420] }
  0x19   :  { %v100_v19 = vsel %vm60_vm0, %v89_v17, -inf  ;;  %v101_v20 = vsel %vm60_vm0, %v90_v18, -inf }
  0x1a   :  { %98 = vmax.xlane.f32.xlu0 %v97_v16  ;;  %69 = vadd.xlane.f32.xlu1 %v68_v13  ;;  %v102_v21 = vmax.f32 %v100_v19, %v101_v20 }
  0x22   :  { %103 = vmax.xlane.f32.xlu0 %v102_v21 }
  0x85   :  { %v65_v25 = vpop.xlane.xlu1 %64 }
  0x86   :  { %v75_v28 = vperm.slane %v65_v25, %v74_v27 }
  0x8d   :  { %v99_v29 = vpop.xlane.xlu0 %98  ;;  %v70_v30 = vpop.xlane.xlu1 %69 }
  0x8e   :  { %v76_v32 = vperm.slane %v70_v30, %v74_v27  ;;  %v107_v36 = vperm.slane %v99_v29, %v74_v27 }
  0x90   :  { %v78_v33 = vsel %vm77_vm2, %v76_v32, %v75_v28 }
  0x91   :  { %v80_v34 = vadd.f32 %v78_v33, %v46_v31 }
  0x93   :  { %82 = vst.msk [vmem:[#allocation2] sm:$0x3] %vm41_vm1, %v80_v34 }
  0x95   :  { %v104_v35 = vpop.xlane.xlu0 %103 }
  0x96   :  { %v108_v38 = vperm.slane %v104_v35, %v74_v27 }
  0x98   :  { %v109_v39 = vsel %vm77_vm2, %v108_v38, %v107_v36 }
  0x99   :  { %v111_v40 = vmax.f32 %v83_v37, %v109_v39 }
  0x9a   :  { %v116_v41 = vld [vmem:[#allocation2] sm:$0x3] }
  0x9b   :  { %112 = vst.msk [vmem:[#allocation3] sm:$0x3] %vm41_vm1, %v111_v40  ;;  %v117_v42 = vmul.f32 0.00390625, %v116_v41 }
  0x9d   :  { %277 = vmatmul.msk.f32.vlgmr.msra.gmra.mxu0 %vm124_vm3, %v117_v42 }
  0xa2   :  { %v118_v43 = vld [vmem:[#allocation3] sm:$0x3] }
  0xa3   :  { %280 = vmatmul.msk.f32.vlgmr.msra.gmra.mxu2 %vm124_vm3, %v118_v43 }
 0x11a   :  { %v148_v46 = vpop.f32.mrf.mxu0 }
 0x11b   :  { %v149_v47 = vadd.f32 %v289_v45, %v148_v46 }
 0x11d   :  { %v152_v48 = vmul.f32 0.01, %v149_v47  ;;  %vm151_vm4 = vcmp.ge.f32.partialorder %v149_v47, 0.0 }
 0x11f   :  { %v153_v49 = vsel %vm151_vm4, %v149_v47, %v152_v48 }
 0x120   :  { %278 = vmatmul.msk.f32.vlgmr.msra.gmra.mxu1 %vm159_vm5, %v153_v49 }
 0x126   :  { %v206_v50 = vpop.f32.mrf.mxu2 }
 0x127   :  { %v207_v51 = vadd.f32 %v289_v45, %v206_v50 }
 0x129   :  { %v210_v52 = vmul.f32 0.01, %v207_v51  ;;  %vm209_vm6 = vcmp.ge.f32.partialorder %v207_v51, 0.0 }
 0x12b   :  { %v211_v53 = vsel %vm209_vm6, %v207_v51, %v210_v52 }
 0x12c   :  { %281 = vmatmul.msk.f32.vlgmr.msra.gmra.mxu3 %vm159_vm5, %v211_v53 }
 0x19d   :  { %v180_v55 = vpop.f32.mrf.mxu1 }
 0x19e   :  { %v181_v56 = vadd.f32 %v290_v54, %v180_v55 }
 0x1a0   :  { %v184_v58 = vmul.f32 0.01, %v181_v56  ;;  %vm183_vm7 = vcmp.ge.f32.partialorder %v181_v56, 0.0 }
 0x1a2   :  { %v185_v61 = vsel %vm183_vm7, %v181_v56, %v184_v58 }
 0x1af   :  { %v232_v57 = vpop.f32.mrf.mxu3 }
 0x1b0   :  { %v233_v59 = vadd.f32 %v290_v54, %v232_v57 }
 0x1b2   :  { %vm235_vm8 = vcmp.ge.f32.partialorder %v233_v59, 0.0  ;;  %v236_v60 = vmul.f32 0.01, %v233_v59 }
 0x1b4   :  { %v237_v62 = vsel %vm235_vm8, %v233_v59, %v236_v60 }
 0x1b5   :  { %v238_v63 = vadd.f32 %v237_v62, %v185_v61 }
 0x1b7   :  { %v282_v0 = vmul.f32 -1.442695, %v238_v63 }
 0x1b9   :  { %291 = vpow2.f32 %v282_v0 }
 0x1bf   :  { %v292_v1 = vpop.eup %291 }
 0x1c0   :  { %v242_v2 = vadd.f32 1.0, %v292_v1 }
 0x1c2   :  { %293 = vrcp.f32 %v242_v2  ;;  %v254_v6 = vand.u32 2147483648, %v242_v2  ;;  %v252_v8 = vand.u32 2147483647, %v242_v2  ;;  %vm248_vm10 = vweird.f32 %v242_v2 }
 0x1c4   :  { %v255_v10 = vor.u32 1.1754944e-38, %v254_v6  ;;  %vm253_vm12 = vcmp.eq.f32.partialorder %v252_v8, 8.507059e+37 }
 0x1c8   :  { %v294_v3 = vpop.eup %293 }
 0x1c9   :  { %v244_v4 = vmul.f32 %v294_v3, %v242_v2  ;;  %vm249_vm9 = vweird.f32 %v294_v3 }
 0x1ca   :  { %vm250_vm11 = vmor %vm248_vm10, %vm249_vm9 }
 0x1cb   :  { %v245_v5 = vsub.f32 1.0, %v244_v4 }
 0x1cd   :  { %v246_v7 = vmul.f32 %v294_v3, %v245_v5 }
 0x1cf   :  { %v247_v9 = vadd.f32 %v294_v3, %v246_v7 }
 0x1d1   :  { %v251_v11 = vsel %vm250_vm11, %v294_v3, %v247_v9 }
 0x1d2   :  { %v256_v12 = vsel %vm253_vm12, %v255_v10, %v251_v11 }
 0x1d3   :  { %258 = vst.msk [vmem:[#allocation7] sm:$0x3] %vm41_vm1, %v256_v12 }
 0x1d4   :  { %269 = dma.vmem_to_hbm [thread:$0]  %s265_s4, 32, %s267_s7, [#allocation6]  }
 0x1d5   :  { %345 = dma.done.wait [#allocation6], 32  }
 0x1d6   :  { %346 = vsyncadd [#allocation6], 4294967264 }
 0x1d7   :  { %274 = vsyncpa [#allocation5], 1 }
 0x1d8   :  { %275 = vsyncpa [#allocation6], 1 }

</bundles_post_ra>
